<compile_context>
chip_gen: v7x
topology: tpu7x:2x2x1
jax: 0.10.0
libtpu: 0.0.40
codegen_flags: <defaults>
</compile_context>

<pallas_src>
import functools

import jax
import jax.numpy as jnp
from jax.experimental import pallas as pl
from jax.experimental.pallas import tpu as pltpu


def _round_up(x, m):
    return (x + m - 1) // m * m


def _dyemb_kernel(ids_ref, len_ref, emb_ref, out_ref, *, method):
    """One (row-tile i, vocab-tile k) grid step.

    ids_ref : int32 [M, tR]      transposed ids (bag position major, rows in lanes)
    len_ref : int32 [1, tR]      bag lengths
    emb_ref : f32   [E_pad, tV]  transposed embedding tile (vocab in lanes)
    out_ref : f32   [E_pad, tR]  transposed output block; accumulator across k
    """
    k = pl.program_id(1)
    nk = pl.num_programs(1)

    @pl.when(k == 0)
    def _init():
        out_ref[...] = jnp.zeros_like(out_ref)

    ids = ids_ref[...]                       # [M, tR] int32
    emb = emb_ref[...]                       # [E_pad, tV]
    M, tR = ids.shape
    tV = emb.shape[1]

    # counts[v, r] = #{m : ids[r, m] == global vocab id v}, built per vocab tile.
    v_iota = jax.lax.broadcasted_iota(jnp.int32, (tV, tR), 0) + k * tV
    counts = jnp.zeros((tV, tR), jnp.float32)
    for m in range(M):                       # M is small & static -> unrolled
        counts = counts + (ids[m:m + 1, :] == v_iota).astype(jnp.float32)

    # Embedding gather + bag-sum as a single MXU contraction over the vocab tile.
    out_ref[...] += jnp.dot(emb, counts.astype(emb.dtype),
                            preferred_element_type=jnp.float32)

    if method == "avg":
        @pl.when(k == nk - 1)
        def _finalize():
            lens = len_ref[...].astype(jnp.float32)                # [1, tR]
            # Guard zero-length bags (original module would emit inf/nan here).
            inv = jnp.where(lens > 0.0, 1.0 / jnp.maximum(lens, 1.0), 0.0)
            out_ref[...] = out_ref[...] * inv                      # broadcast over E


def dyemb_forward(dynamic_ids, dynamic_lengths, embedding_table,
                  field_size, max_feature_size, method="avg",
                  row_tile=512, vocab_tile=None):
    """JAX/Pallas equivalent of DyEmb.forward.

    dynamic_ids:      int   [B, field_size * max_feature_size]
    dynamic_lengths:  int   [B, field_size]
    embedding_table:  f32   [total_feature_size, embedding_size] (row 0 == zeros)
    returns:          f32   [B, field_size, embedding_size]
    """
    assert method in ("avg", "sum")
    B = dynamic_ids.shape[0]
    M = max_feature_size
    assert dynamic_ids.shape[-1] == field_size * M
    V, E = embedding_table.shape
    R = B * field_size

    # ---- tile sizes (lane axis kept a multiple of 128 -> lane-dense DMAs/stores) ----
    tR = min(_round_up(row_tile, 128), _round_up(R, 128))
    R_pad = _round_up(R, tR)
    E_pad = _round_up(E, 8)
    itemsize = jnp.dtype(embedding_table.dtype).itemsize
    if vocab_tile is None:
        if _round_up(V, 128) * E_pad * itemsize <= 4 * 1024 * 1024:
            # Whole (transposed) table fits comfortably -> single resident block,
            # constant block index => DMA'd once for the whole grid.
            vocab_tile = _round_up(V, 128)
        else:
            vocab_tile = 1024
    tV = min(_round_up(vocab_tile, 128), _round_up(V, 128))
    V_pad = _round_up(V, tV)

    # ---- layout plumbing (outside the kernel; not compute) ----
    ids_rows = dynamic_ids.reshape(R, M).astype(jnp.int32)
    ids_t = jnp.zeros((M, R_pad), jnp.int32).at[:, :R].set(ids_rows.T)
    lens_t = jnp.zeros((1, R_pad), jnp.int32).at[0, :R].set(
        dynamic_lengths.reshape(R).astype(jnp.int32))
    emb_t = jnp.zeros((E_pad, V_pad), embedding_table.dtype).at[:E, :V].set(
        embedding_table.T)

    grid = (R_pad // tR, V_pad // tV)
    kernel = functools.partial(_dyemb_kernel, method=method)

    out_t = pl.pallas_call(
        kernel,
        out_shape=jax.ShapeDtypeStruct((E_pad, R_pad), jnp.float32),
        grid=grid,
        in_specs=[
            pl.BlockSpec((M, tR), lambda i, k: (0, i)),       # ids (transposed)
            pl.BlockSpec((1, tR), lambda i, k: (0, i)),       # lengths
            pl.BlockSpec((E_pad, tV), lambda i, k: (0, k)),   # embedding (transposed)
        ],
        out_specs=pl.BlockSpec((E_pad, tR), lambda i, k: (0, i)),
        compiler_params=pltpu.CompilerParams(
            dimension_semantics=("parallel", "arbitrary"),
            vmem_limit_bytes=64 * 1024 * 1024,
        ),
    )(ids_t, lens_t, emb_t)

    # Un-pad / un-transpose outside the kernel.
    return out_t[:E, :R].T.reshape(B, field_size, E)


def _reference(dynamic_ids, dynamic_lengths, embedding_table,
               field_size, max_feature_size, method="avg"):
    B = dynamic_ids.shape[0]
    E = embedding_table.shape[1]
    ids_rows = dynamic_ids.reshape(-1, max_feature_size)
    emb = embedding_table[ids_rows]                       # [R, M, E]
    s = jnp.sum(emb, axis=1)                              # [R, E]
    if method == "avg":
        s = s / dynamic_lengths.reshape(-1, 1).astype(jnp.float32)
    return s.reshape(B, field_size, E)


def _make_inputs(key, B, field_size, max_feature_size, total_feature_size,
                 embedding_size):
    k_emb, k_ids, k_len = jax.random.split(key, 3)
    emb_table = jax.random.normal(
        k_emb, (total_feature_size, embedding_size), dtype=jnp.float32)
    emb_table = emb_table.at[0].set(0.0)                  # padding_idx=0
    dyn_len = jax.random.randint(k_len, (B, field_size), 1, max_feature_size + 1,
                                 dtype=jnp.int32)
    raw_ids = jax.random.randint(k_ids, (B, field_size, max_feature_size),
                                 1, total_feature_size, dtype=jnp.int32)
    pos = jnp.arange(max_feature_size, dtype=jnp.int32)[None, None, :]
    raw_ids = jnp.where(pos < dyn_len[:, :, None], raw_ids, 0)
    dyn_ids = raw_ids.reshape(B, field_size * max_feature_size)
    return dyn_ids, dyn_len, emb_table


if __name__ == "__main__":
    key = jax.random.PRNGKey(0)
    k1, k2 = jax.random.split(key)

    # --- Test 1: small, module-consistent shapes (single-tile grid, 'avg') ---
    B, F, M, V, E = 4, 4, 5, 64, 8
    dyn_ids, dyn_len, emb_table = _make_inputs(k1, B, F, M, V, E)
    out = dyemb_forward(dyn_ids, dyn_len, emb_table, F, M, method="avg")
    out = jax.block_until_ready(out)
    ref = _reference(dyn_ids, dyn_len, emb_table, F, M, method="avg")
    assert out.shape == (B, F, E)
    assert jnp.allclose(out, ref, atol=1e-5, rtol=1e-5)

    # --- Test 2: exercises multi-tile grid (2 row tiles x 3 vocab tiles, 'sum') ---
    B2, F2, M2, V2, E2 = 48, 4, 6, 300, 12
    dyn_ids2, dyn_len2, emb_table2 = _make_inputs(k2, B2, F2, M2, V2, E2)
    out2 = dyemb_forward(dyn_ids2, dyn_len2, emb_table2, F2, M2, method="sum",
                         row_tile=128, vocab_tile=128)
    out2 = jax.block_until_ready(out2)
    ref2 = _reference(dyn_ids2, dyn_len2, emb_table2, F2, M2, method="sum")
    assert out2.shape == (B2, F2, E2)
    assert jnp.allclose(out2, ref2, atol=1e-5, rtol=1e-5)

    print("KERNEL_OK")
</pallas_src>

<mosaic_0001>
module attributes {stable_mosaic.version = 11 : i64} {
  func.func @_dyemb_kernel(%arg0: i32, %arg1: i32, %arg2: memref<5x128xi32, #tpu.memory_space<vmem>>, %arg3: memref<1x128xi32, #tpu.memory_space<vmem>>, %arg4: memref<8x128xf32, #tpu.memory_space<vmem>>, %arg5: memref<8x128xf32, #tpu.memory_space<vmem>>) attributes {dimension_semantics = [#tpu.dimension_semantics<parallel>, #tpu.dimension_semantics<arbitrary>], iteration_bounds = array<i64: 1, 1>, scalar_prefetch = 0 : i64, scratch_operands = 0 : i64, tpu.core_type = #tpu.core_type<tc>, window_params = [{transform_indices = @transform_0, window_bounds = array<i64: 5, 128>}, {transform_indices = @transform_1, window_bounds = array<i64: 1, 128>}, {transform_indices = @transform_2, window_bounds = array<i64: 8, 128>}, {transform_indices = @transform_3, window_bounds = array<i64: 8, 128>}]} {
    %c0_i32 = arith.constant 0 : i32
    %0 = arith.cmpi eq, %arg1, %c0_i32 : i32
    %1 = arith.extui %0 : i1 to i32
    %c0_i32_0 = arith.constant 0 : i32
    %2 = arith.cmpi ne, %1, %c0_i32_0 : i32
    scf.if %2 {
      %cst_11 = arith.constant 0.000000e+00 : f32
      %47 = vector.broadcast %cst_11 : f32 to vector<8x128xf32>
      %c0_12 = arith.constant 0 : index
      %c0_13 = arith.constant 0 : index
      %48 = vector.load %arg5[%c0_12, %c0_13] : memref<8x128xf32, #tpu.memory_space<vmem>>, vector<8x128xf32>
      tpu.vector_store %arg5[%c0_12, %c0_13], %47 {strides = array<i32>} : memref<8x128xf32, #tpu.memory_space<vmem>>, vector<8x128xf32>,
    } else {
    }
    %c0 = arith.constant 0 : index
    %c0_1 = arith.constant 0 : index
    %3 = vector.load %arg2[%c0, %c0_1] : memref<5x128xi32, #tpu.memory_space<vmem>>, vector<5x128xi32>
    %c0_2 = arith.constant 0 : index
    %c0_3 = arith.constant 0 : index
    %4 = vector.load %arg4[%c0_2, %c0_3] : memref<8x128xf32, #tpu.memory_space<vmem>>, vector<8x128xf32>
    %5 = tpu.iota {dimensions = array<i32: 0>} : vector<128x128xi32>
    %c128_i32 = arith.constant 128 : i32
    %6 = arith.muli %arg1, %c128_i32 : i32
    %7 = vector.broadcast %6 : i32 to vector<128x128xi32>
    %8 = arith.addi %5, %7 : vector<128x128xi32>
    %cst = arith.constant 0.000000e+00 : f32
    %9 = vector.broadcast %cst : f32 to vector<128x128xf32>
    %10 = vector.extract_strided_slice %3 {offsets = [0, 0], sizes = [1, 128], strides = [1, 1]} : vector<5x128xi32> to vector<1x128xi32>
    %11 = vector.broadcast %10 : vector<1x128xi32> to vector<128x128xi32>
    %12 = arith.cmpi eq, %11, %8 : vector<128x128xi32>
    %13 = arith.extui %12 : vector<128x128xi1> to vector<128x128xi32>
    %14 = arith.sitofp %13 : vector<128x128xi32> to vector<128x128xf32>
    %15 = arith.addf %9, %14 : vector<128x128xf32>
    %16 = vector.extract_strided_slice %3 {offsets = [1, 0], sizes = [1, 128], strides = [1, 1]} : vector<5x128xi32> to vector<1x128xi32>
    %17 = vector.broadcast %16 : vector<1x128xi32> to vector<128x128xi32>
    %18 = arith.cmpi eq, %17, %8 : vector<128x128xi32>
    %19 = arith.extui %18 : vector<128x128xi1> to vector<128x128xi32>
    %20 = arith.sitofp %19 : vector<128x128xi32> to vector<128x128xf32>
    %21 = arith.addf %15, %20 : vector<128x128xf32>
    %22 = vector.extract_strided_slice %3 {offsets = [2, 0], sizes = [1, 128], strides = [1, 1]} : vector<5x128xi32> to vector<1x128xi32>
    %23 = vector.broadcast %22 : vector<1x128xi32> to vector<128x128xi32>
    %24 = arith.cmpi eq, %23, %8 : vector<128x128xi32>
    %25 = arith.extui %24 : vector<128x128xi1> to vector<128x128xi32>
    %26 = arith.sitofp %25 : vector<128x128xi32> to vector<128x128xf32>
    %27 = arith.addf %21, %26 : vector<128x128xf32>
    %28 = vector.extract_strided_slice %3 {offsets = [3, 0], sizes = [1, 128], strides = [1, 1]} : vector<5x128xi32> to vector<1x128xi32>
    %29 = vector.broadcast %28 : vector<1x128xi32> to vector<128x128xi32>
    %30 = arith.cmpi eq, %29, %8 : vector<128x128xi32>
    %31 = arith.extui %30 : vector<128x128xi1> to vector<128x128xi32>
    %32 = arith.sitofp %31 : vector<128x128xi32> to vector<128x128xf32>
    %33 = arith.addf %27, %32 : vector<128x128xf32>
    %34 = vector.extract_strided_slice %3 {offsets = [4, 0], sizes = [1, 128], strides = [1, 1]} : vector<5x128xi32> to vector<1x128xi32>
    %35 = vector.broadcast %34 : vector<1x128xi32> to vector<128x128xi32>
    %36 = arith.cmpi eq, %35, %8 : vector<128x128xi32>
    %37 = arith.extui %36 : vector<128x128xi1> to vector<128x128xi32>
    %38 = arith.sitofp %37 : vector<128x128xi32> to vector<128x128xf32>
    %39 = arith.addf %33, %38 : vector<128x128xf32>
    %c0_4 = arith.constant 0 : index
    %c0_5 = arith.constant 0 : index
    %40 = vector.load %arg5[%c0_4, %c0_5] : memref<8x128xf32, #tpu.memory_space<vmem>>, vector<8x128xf32>
    %cst_6 = arith.constant dense<0.000000e+00> : vector<8x128xf32>
    %41 = tpu.matmul %4, %39, %cst_6 {dimension_numbers = #tpu.dot_dimension_numbers<[1], [0], [0], [1], [0, 0, 1, 1], [], []>} : vector<8x128xf32>, vector<128x128xf32>, vector<8x128xf32> -> vector<8x128xf32>
    %42 = arith.addf %40, %41 : vector<8x128xf32>
    %c0_7 = arith.constant 0 : index
    %c0_8 = arith.constant 0 : index
    %43 = vector.load %arg5[%c0_7, %c0_8] : memref<8x128xf32, #tpu.memory_space<vmem>>, vector<8x128xf32>
    tpu.vector_store %arg5[%c0_7, %c0_8], %42 {strides = array<i32>} : memref<8x128xf32, #tpu.memory_space<vmem>>, vector<8x128xf32>,
    %c0_i32_9 = arith.constant 0 : i32
    %44 = arith.cmpi eq, %arg1, %c0_i32_9 : i32
    %45 = arith.extui %44 : i1 to i32
    %c0_i32_10 = arith.constant 0 : i32
    %46 = arith.cmpi ne, %45, %c0_i32_10 : i32
    scf.if %46 {
      %c0_11 = arith.constant 0 : index
      %c0_12 = arith.constant 0 : index
      %47 = vector.load %arg3[%c0_11, %c0_12] : memref<1x128xi32, #tpu.memory_space<vmem>>, vector<1x128xi32>
      %48 = arith.sitofp %47 : vector<1x128xi32> to vector<1x128xf32>
      %cst_13 = arith.constant 0.000000e+00 : f32
      %49 = vector.broadcast %cst_13 : f32 to vector<1x128xf32>
      %50 = arith.cmpf ogt, %48, %49 : vector<1x128xf32>
      %cst_14 = arith.constant 1.000000e+00 : f32
      %51 = vector.broadcast %cst_14 : f32 to vector<1x128xf32>
      %52 = arith.maximumf %48, %51 : vector<1x128xf32>
      %cst_15 = arith.constant 1.000000e+00 : f32
      %53 = vector.broadcast %cst_15 : f32 to vector<1x128xf32>
      %54 = arith.divf %53, %52 : vector<1x128xf32>
      %cst_16 = arith.constant 0.000000e+00 : f32
      %55 = vector.broadcast %cst_16 : f32 to vector<1x128xf32>
      %56 = arith.select %50, %54, %55 : vector<1x128xi1>, vector<1x128xf32>
      %c0_17 = arith.constant 0 : index
      %c0_18 = arith.constant 0 : index
      %57 = vector.load %arg5[%c0_17, %c0_18] : memref<8x128xf32, #tpu.memory_space<vmem>>, vector<8x128xf32>
      %58 = vector.broadcast %56 : vector<1x128xf32> to vector<8x128xf32>
      %59 = arith.mulf %57, %58 : vector<8x128xf32>
      %c0_19 = arith.constant 0 : index
      %c0_20 = arith.constant 0 : index
      %60 = vector.load %arg5[%c0_19, %c0_20] : memref<8x128xf32, #tpu.memory_space<vmem>>, vector<8x128xf32>
      tpu.vector_store %arg5[%c0_19, %c0_20], %59 {strides = array<i32>} : memref<8x128xf32, #tpu.memory_space<vmem>>, vector<8x128xf32>,
    } else {
    }
    return
  }
  func.func @transform_0(%arg0: i32, %arg1: i32) -> (i32, i32) {
    %c0_i32 = arith.constant 0 : i32
    %c0_i32_0 = arith.constant 0 : i32
    return %c0_i32, %arg0 : i32, i32
  }
  func.func @transform_1(%arg0: i32, %arg1: i32) -> (i32, i32) {
    %c0_i32 = arith.constant 0 : i32
    %c0_i32_0 = arith.constant 0 : i32
    return %c0_i32, %arg0 : i32, i32
  }
  func.func @transform_2(%arg0: i32, %arg1: i32) -> (i32, i32) {
    %c0_i32 = arith.constant 0 : i32
    %c0_i32_0 = arith.constant 0 : i32
    return %c0_i32, %arg1 : i32, i32
  }
  func.func @transform_3(%arg0: i32, %arg1: i32) -> (i32, i32) {
    %c0_i32 = arith.constant 0 : i32
    %c0_i32_0 = arith.constant 0 : i32
    return %c0_i32, %arg0 : i32, i32
  }
}

</mosaic_0001>

<bundles_post_ra>
// kernel: tpu_custom_call.1
= control target key start
LH: loop header
LB: loop body
LE: loop exit
PB: predicated region body
PF: predicated region fallthrough
CT: control target
= control target key end

     0   :  { %8 = vsyncpa [#allocation3], 0  ;;  %s1175_s0 = inlined_call_operand.hbm [shape: s32[5,128], index: 0, kind: input, shape index: {}]   ;;  %s1176_s1 = inlined_call_operand.hbm [shape: s32[1,128], index: 1, kind: input, shape index: {}]   ;;  %s1177_s2 = inlined_call_operand.hbm [shape: f32[8,128], index: 2, kind: input, shape index: {}]   ;;  %s1178_s3 = inlined_call_operand.hbm [shape: f32[8,128], index: 3, kind: output, shape index: {}]  }
   0x1   :  { %9 = vsyncpa [#allocation6], 0 }
   0x2   :  { %10 = vsyncpa [#allocation4], 0  ;;  %s799_s12 = smov [#allocation5]   ;;  %s800_s14 = smov [#allocation2]  }
   0x3   :  { %s27_s13 = sshll.u32 %s799_s12, 4  ;;  %s17_s15 = sshll.u32 %s800_s14, 4  ;;  %s28_s13 = int_to_ptr.vmem [resolvable:$true] %s27_s13  ;;  %s18_s15 = int_to_ptr.vmem [resolvable:$true] %s17_s15 }
   0x4   :  { %s705_s18 = scalar_lea.hbm %s1176_s1, 16 }
   0x5   :  { %p706_p0 = scmp.ne.s32.totalorder %s1176_s1, %s705_s18  ;;  %p709_p1 = scmp.lt.u32.totalorder %s705_s18, %s1176_s1 }
   0x7   :  { %p711_p2 = pnand %p709_p1, %p706_p0 }
   0x9   :  { %714 = shalt.err (!%p711_p2)
}
   0xa   :  { %s715_s23 = scalar_lea.vmem %s28_s13, 16  ;;  %s719_s24 = scalar_lea.vmem %s28_s13, 32 }
   0xb   :  { %p716_p3 = scmp.ne.s32.totalorder %s28_s13, %s715_s23  ;;  %p720_p4 = scmp.lt.s32.totalorder %s28_s13, %s28_s13 }
   0xc   :  { %p721_p5 = scmp.lt.s32.totalorder %s719_s24, %s715_s23 }
   0xe   :  { %p722_p6 = por %p721_p5, %p720_p4 }
  0x10   :  { %p723_p7 = pnand %p722_p6, %p716_p3 }
  0x12   :  { %726 = shalt.err (!%p723_p7)
}
  0x13   :  { %30 = dma.hbm_to_vmem [thread:$0]  %s1176_s1, 16, %s28_s13, [#allocation6]  }
  0x14   :  { %s727_s29 = scalar_lea.hbm %s1175_s0, 128 }
  0x15   :  { %p728_p8 = scmp.ne.s32.totalorder %s1175_s0, %s727_s29  ;;  %p731_p9 = scmp.lt.u32.totalorder %s727_s29, %s1175_s0 }
  0x17   :  { %p733_p10 = pnand %p731_p9, %p728_p8 }
  0x19   :  { %736 = shalt.err (!%p733_p10)
}
  0x1a   :  { %s737_s7 = scalar_lea.vmem %s18_s15, 128  ;;  %p742_p12 = scmp.lt.s32.totalorder %s18_s15, %s18_s15 }
  0x1b   :  { %p738_p11 = scmp.ne.s32.totalorder %s18_s15, %s737_s7  ;;  %p743_p13 = scmp.lt.s32.totalorder %s737_s7, %s737_s7 }
  0x1d   :  { %p744_p0 = por %p743_p13, %p742_p12 }
  0x1f   :  { %p745_p1 = pnand %p744_p0, %p738_p11 }
  0x21   :  { %748 = shalt.err (!%p745_p1)
}
  0x22   :  { %20 = dma.hbm_to_vmem [thread:$0]  %s1175_s0, 128, %s18_s15, [#allocation3]  }
  0x23   :  { %s801_s9 = smov [#allocation7]   ;;  %s749_s13 = scalar_lea.hbm %s1177_s2, 128 }
  0x24   :  { %s37_s10 = sshll.u32 %s801_s9, 4  ;;  %p750_p2 = scmp.ne.s32.totalorder %s1177_s2, %s749_s13  ;;  %s38_s10 = int_to_ptr.vmem [resolvable:$true] %s37_s10 }
  0x25   :  { %p753_p3 = scmp.lt.u32.totalorder %s749_s13, %s1177_s2 }
  0x27   :  { %p755_p4 = pnand %p753_p3, %p750_p2 }
  0x29   :  { %758 = shalt.err (!%p755_p4)
}
  0x2a   :  { %s759_s19 = scalar_lea.vmem %s38_s10, 128  ;;  %p764_p6 = scmp.lt.s32.totalorder %s38_s10, %s38_s10 }
  0x2b   :  { %p760_p5 = scmp.ne.s32.totalorder %s38_s10, %s759_s19  ;;  %p765_p7 = scmp.lt.s32.totalorder %s759_s19, %s759_s19 }
  0x2d   :  { %p766_p8 = por %p765_p7, %p764_p6 }
  0x2f   :  { %p767_p9 = pnand %p766_p8, %p760_p5 }
  0x31   :  { %770 = shalt.err (!%p767_p9)
}
  0x32   :  { %40 = dma.hbm_to_vmem [thread:$0]  %s1177_s2, 128, %s38_s10, [#allocation6]  }
  0x33   :  { %793 = dma.done.wait [#allocation3], 128  }
  0x34   :  { %794 = vsyncadd [#allocation3], 4294967168 }
  0x35   :  { %795 = dma.done.wait [#allocation6], 144  }
  0x36   :  { %796 = vsyncadd [#allocation6], 4294967152  ;;  %v57_v0 = vlaneseq  ;;  %v802_v1 = vmov 0.0|0.0   ;;  %vm803_vm0 = vmmov 0   ;;  %v804_v2 = vmov 0.0   ;;  %s805_s2 = smov [#allocation8]  }
  0x37   :  { %672 = vmatprep.subr.bf16.mxu0 %v802_v1  ;;  %669 = vmatprep.mubr.msk.f32.mxu0 %vm803_vm0, %v804_v2  ;;  %v55_v16 = vld [vmem:[#allocation2] sm:$0x1f]  ;;  %s530_s20 = sshll.u32 %s805_s2, 4  ;;  %s531_s20 = int_to_ptr.vmem [resolvable:$true] %s530_s20 }
  0x38   :  { %v864_v3 = vshrl.u32 %v57_v0, 7  ;;  %s771_s21 = scalar_lea.vmem %s531_s20, 128  ;;  %p776_p11 = scmp.lt.s32.totalorder %s531_s20, %s531_s20 }
  0x39   :  { %p772_p10 = scmp.ne.s32.totalorder %s531_s20, %s771_s21  ;;  %p777_p12 = scmp.lt.s32.totalorder %s771_s21, %s771_s21 }
  0x3a   :  { %v59_v4 = vadd.s32 8, %v864_v3  ;;  %v94_v5 = vsub.s32 0, %v864_v3  ;;  %v162_v6 = vsub.s32 1, %v864_v3  ;;  %v230_v7 = vsub.s32 2, %v864_v3 }
  0x3b   :  { %v298_v8 = vsub.s32 3, %v864_v3  ;;  %v366_v9 = vsub.s32 4, %v864_v3  ;;  %v873_v10 = vadd.s32 16, %v864_v3  ;;  %v876_v11 = vadd.s32 24, %v864_v3  ;;  %p778_p13 = por %p777_p12, %p776_p11 }
  0x3c   :  { %v879_v12 = vadd.s32 32, %v864_v3  ;;  %v882_v13 = vadd.s32 40, %v864_v3  ;;  %v885_v14 = vadd.s32 48, %v864_v3  ;;  %v888_v15 = vadd.s32 56, %v864_v3 }
  0x3d   :  { %v891_v17 = vadd.s32 64, %v864_v3  ;;  %v894_v18 = vadd.s32 72, %v864_v3  ;;  %v897_v19 = vadd.s32 80, %v864_v3  ;;  %v900_v20 = vadd.s32 88, %v864_v3  ;;  %p779_p0 = pnand %p778_p13, %p772_p10 }
  0x3e   :  { %v904_v21 = vrot.slane %v55_v16, %v94_v5  ;;  %v906_v22 = vrot.slane %v55_v16, %v162_v6  ;;  %v908_v23 = vrot.slane %v55_v16, %v230_v7  ;;  %v910_v24 = vrot.slane %v55_v16, %v298_v8 }
  0x3f   :  { %v912_v25 = vrot.slane %v55_v16, %v366_v9  ;;  %v915_v26 = vadd.s32 96, %v864_v3  ;;  %v918_v27 = vadd.s32 104, %v864_v3  ;;  %v921_v28 = vadd.s32 112, %v864_v3 }
  0x40   :  { %vm96_vm1 = vcmp.eq.s32.totalorder %v904_v21, %v864_v3  ;;  %vm97_vm2 = vcmp.eq.s32.totalorder %v904_v21, %v59_v4  ;;  %vm164_vm3 = vcmp.eq.s32.totalorder %v906_v22, %v864_v3  ;;  %vm165_vm4 = vcmp.eq.s32.totalorder %v906_v22, %v59_v4 }
  0x41   :  { %v540_v29 = vsel %vm96_vm1, 1.0, %v804_v2  ;;  %v541_v30 = vsel %vm97_vm2, 1.0, %v804_v2  ;;  %v556_v31 = vsel %vm164_vm3, 1.0, %v804_v2  ;;  %v557_v32 = vsel %vm165_vm4, 1.0, %v804_v2 }
  0x42   :  { %v212_v33 = vadd.f32 %v556_v31, %v540_v29  ;;  %v213_v34 = vadd.f32 %v557_v32, %v541_v30  ;;  %vm232_vm5 = vcmp.eq.s32.totalorder %v908_v23, %v864_v3  ;;  %vm233_vm6 = vcmp.eq.s32.totalorder %v908_v23, %v59_v4 }
  0x43   :  { %v572_v35 = vsel %vm232_vm5, 1.0, %v804_v2  ;;  %v573_v36 = vsel %vm233_vm6, 1.0, %v804_v2  ;;  %vm300_vm7 = vcmp.eq.s32.totalorder %v910_v24, %v864_v3  ;;  %vm301_vm8 = vcmp.eq.s32.totalorder %v910_v24, %v59_v4 }
  0x44   :  { %v280_v37 = vadd.f32 %v572_v35, %v212_v33  ;;  %v281_v38 = vadd.f32 %v573_v36, %v213_v34  ;;  %v588_v39 = vsel %vm300_vm7, 1.0, %v804_v2  ;;  %v589_v40 = vsel %vm301_vm8, 1.0, %v804_v2 }
  0x45   :  { %vm368_vm9 = vcmp.eq.s32.totalorder %v912_v25, %v864_v3  ;;  %vm369_vm10 = vcmp.eq.s32.totalorder %v912_v25, %v59_v4  ;;  %vm98_vm11 = vcmp.eq.s32.totalorder %v904_v21, %v873_v10  ;;  %vm99_vm12 = vcmp.eq.s32.totalorder %v904_v21, %v876_v11 }
  0x46   :  { %v348_v41 = vadd.f32 %v588_v39, %v280_v37  ;;  %v349_v42 = vadd.f32 %v589_v40, %v281_v38  ;;  %v604_v43 = vsel %vm368_vm9, 1.0, %v804_v2  ;;  %v605_v44 = vsel %vm369_vm10, 1.0, %v804_v2 }
  0x47   :  { %v542_v45 = vsel %vm98_vm11, 1.0, %v804_v2  ;;  %v543_v46 = vsel %vm99_vm12, 1.0, %v804_v2  ;;  %vm166_vm13 = vcmp.eq.s32.totalorder %v906_v22, %v873_v10  ;;  %vm167_vm14 = vcmp.eq.s32.totalorder %v906_v22, %v876_v11 }
  0x48   :  { %v416_v47 = vadd.f32 %v604_v43, %v348_v41  ;;  %v417_v48 = vadd.f32 %v605_v44, %v349_v42  ;;  %v558_v49 = vsel %vm166_vm13, 1.0, %v804_v2  ;;  %v559_v50 = vsel %vm167_vm14, 1.0, %v804_v2 }
  0x49   :  { %v214_v51 = vadd.f32 %v558_v49, %v542_v45  ;;  %v215_v52 = vadd.f32 %v559_v50, %v543_v46  ;;  %vm234_vm15 = vcmp.eq.s32.totalorder %v908_v23, %v873_v10  ;;  %vm235_vm0 = vcmp.eq.s32.totalorder %v908_v23, %v876_v11 }
  0x4a   :  { %v673_v53 = vpack.c.bf16 %v417_v48, %v416_v47  ;;  %v574_v54 = vsel %vm234_vm15, 1.0, %v804_v2  ;;  %v575_v55 = vsel %vm235_vm0, 1.0, %v804_v2  ;;  %vm302_vm1 = vcmp.eq.s32.totalorder %v910_v24, %v873_v10 }
  0x4b   :  { %v282_v56 = vadd.f32 %v574_v54, %v214_v51  ;;  %v283_v57 = vadd.f32 %v575_v55, %v215_v52  ;;  %vm303_vm2 = vcmp.eq.s32.totalorder %v910_v24, %v876_v11  ;;  %v590_v58 = vsel %vm302_vm1, 1.0, %v804_v2 }
  0x4c   :  { %674 = vmatpush3.bf16.msra.mxu0 %v673_v53  ;;  %v591_v59 = vsel %vm303_vm2, 1.0, %v804_v2  ;;  %vm370_vm3 = vcmp.eq.s32.totalorder %v912_v25, %v873_v10  ;;  %vm371_vm4 = vcmp.eq.s32.totalorder %v912_v25, %v876_v11  ;;  %vm100_vm5 = vcmp.eq.s32.totalorder %v904_v21, %v879_v12 }
  0x4d   :  { %675 = vmatprep.subr.bf16.mxu0 %v802_v1  ;;  %v350_v60 = vadd.f32 %v590_v58, %v282_v56  ;;  %v351_v61 = vadd.f32 %v591_v59, %v283_v57  ;;  %v606_v62 = vsel %vm370_vm3, 1.0, %v804_v2  ;;  %v607_v63 = vsel %vm371_vm4, 1.0, %v804_v2 }
  0x4e   :  { %vm101_vm6 = vcmp.eq.s32.totalorder %v904_v21, %v882_v13  ;;  %v544_v0 = vsel %vm100_vm5, 1.0, %v804_v2  ;;  %vm168_vm7 = vcmp.eq.s32.totalorder %v906_v22, %v879_v12  ;;  %vm169_vm8 = vcmp.eq.s32.totalorder %v906_v22, %v882_v13 }
  0x4f   :  { %v418_v4 = vadd.f32 %v606_v62, %v350_v60  ;;  %v419_v6 = vadd.f32 %v607_v63, %v351_v61  ;;  %v545_v7 = vsel %vm101_vm6, 1.0, %v804_v2  ;;  %v560_v8 = vsel %vm168_vm7, 1.0, %v804_v2 }
  0x50   :  { %v561_v9 = vsel %vm169_vm8, 1.0, %v804_v2  ;;  %v216_v10 = vadd.f32 %v560_v8, %v544_v0  ;;  %vm236_vm9 = vcmp.eq.s32.totalorder %v908_v23, %v879_v12  ;;  %vm237_vm10 = vcmp.eq.s32.totalorder %v908_v23, %v882_v13 }
  0x51   :  { %v676_v11 = vpack.c.bf16 %v419_v6, %v418_v4  ;;  %v217_v16 = vadd.f32 %v561_v9, %v545_v7  ;;  %v576_v29 = vsel %vm236_vm9, 1.0, %v804_v2  ;;  %v577_v30 = vsel %vm237_vm10, 1.0, %v804_v2 }
  0x52   :  { %v284_v31 = vadd.f32 %v576_v29, %v216_v10  ;;  %vm304_vm11 = vcmp.eq.s32.totalorder %v910_v24, %v879_v12  ;;  %vm305_vm12 = vcmp.eq.s32.totalorder %v910_v24, %v882_v13  ;;  %vm372_vm13 = vcmp.eq.s32.totalorder %v912_v25, %v879_v12 }
  0x53   :  { %677 = vmatpush3.bf16.msra.mxu0 %v676_v11  ;;  %v285_v32 = vadd.f32 %v577_v30, %v217_v16  ;;  %v592_v33 = vsel %vm304_vm11, 1.0, %v804_v2  ;;  %v593_v34 = vsel %vm305_vm12, 1.0, %v804_v2  ;;  %vm373_vm14 = vcmp.eq.s32.totalorder %v912_v25, %v882_v13 }
  0x54   :  { %678 = vmatprep.subr.bf16.mxu0 %v802_v1  ;;  %v352_v35 = vadd.f32 %v592_v33, %v284_v31  ;;  %v608_v36 = vsel %vm372_vm13, 1.0, %v804_v2  ;;  %v609_v37 = vsel %vm373_vm14, 1.0, %v804_v2  ;;  %vm102_vm15 = vcmp.eq.s32.totalorder %v904_v21, %v885_v14 }
  0x55   :  { %v353_v12 = vadd.f32 %v593_v34, %v285_v32  ;;  %vm103_vm0 = vcmp.eq.s32.totalorder %v904_v21, %v888_v15  ;;  %v546_v38 = vsel %vm102_vm15, 1.0, %v804_v2  ;;  %vm170_vm1 = vcmp.eq.s32.totalorder %v906_v22, %v885_v14 }
  0x56   :  { %v420_v13 = vadd.f32 %v608_v36, %v352_v35  ;;  %v547_v39 = vsel %vm103_vm0, 1.0, %v804_v2  ;;  %vm171_vm2 = vcmp.eq.s32.totalorder %v906_v22, %v888_v15  ;;  %v562_v40 = vsel %vm170_vm1, 1.0, %v804_v2 }
  0x57   :  { %v421_v41 = vadd.f32 %v609_v37, %v353_v12  ;;  %v563_v42 = vsel %vm171_vm2, 1.0, %v804_v2  ;;  %v218_v43 = vadd.f32 %v562_v40, %v546_v38  ;;  %vm238_vm3 = vcmp.eq.s32.totalorder %v908_v23, %v885_v14 }
  0x58   :  { %v219_v44 = vadd.f32 %v563_v42, %v547_v39  ;;  %vm239_vm4 = vcmp.eq.s32.totalorder %v908_v23, %v888_v15  ;;  %v578_v45 = vsel %vm238_vm3, 1.0, %v804_v2  ;;  %vm306_vm5 = vcmp.eq.s32.totalorder %v910_v24, %v885_v14 }
  0x59   :  { %v679_v46 = vpack.c.bf16 %v421_v41, %v420_v13  ;;  %v579_v47 = vsel %vm239_vm4, 1.0, %v804_v2  ;;  %v286_v48 = vadd.f32 %v578_v45, %v218_v43  ;;  %vm307_vm6 = vcmp.eq.s32.totalorder %v910_v24, %v888_v15 }
  0x5a   :  { %v287_v49 = vadd.f32 %v579_v47, %v219_v44  ;;  %v594_v50 = vsel %vm306_vm5, 1.0, %v804_v2  ;;  %v595_v51 = vsel %vm307_vm6, 1.0, %v804_v2  ;;  %vm374_vm7 = vcmp.eq.s32.totalorder %v912_v25, %v885_v14 }
  0x5b   :  { %680 = vmatpush3.bf16.msra.mxu0 %v679_v46  ;;  %v354_v52 = vadd.f32 %v594_v50, %v286_v48  ;;  %vm375_vm8 = vcmp.eq.s32.totalorder %v912_v25, %v888_v15  ;;  %v610_v53 = vsel %vm374_vm7, 1.0, %v804_v2  ;;  %vm104_vm9 = vcmp.eq.s32.totalorder %v904_v21, %v891_v17 }
  0x5c   :  { %681 = vmatprep.subr.bf16.mxu0 %v802_v1  ;;  %v355_v54 = vadd.f32 %v595_v51, %v287_v49  ;;  %v611_v55 = vsel %vm375_vm8, 1.0, %v804_v2  ;;  %vm105_vm10 = vcmp.eq.s32.totalorder %v904_v21, %v894_v18  ;;  %v548_v14 = vsel %vm104_vm9, 1.0, %v804_v2 }
  0x5d   :  { %v422_v56 = vadd.f32 %v610_v53, %v354_v52  ;;  %v549_v57 = vsel %vm105_vm10, 1.0, %v804_v2  ;;  %vm172_vm11 = vcmp.eq.s32.totalorder %v906_v22, %v891_v17  ;;  %vm173_vm12 = vcmp.eq.s32.totalorder %v906_v22, %v894_v18 }
  0x5e   :  { %v423_v15 = vadd.f32 %v611_v55, %v355_v54  ;;  %v564_v58 = vsel %vm172_vm11, 1.0, %v804_v2  ;;  %v565_v59 = vsel %vm173_vm12, 1.0, %v804_v2  ;;  %vm240_vm13 = vcmp.eq.s32.totalorder %v908_v23, %v891_v17 }
  0x5f   :  { %v220_v60 = vadd.f32 %v564_v58, %v548_v14  ;;  %v221_v61 = vadd.f32 %v565_v59, %v549_v57  ;;  %vm241_vm14 = vcmp.eq.s32.totalorder %v908_v23, %v894_v18  ;;  %v580_v62 = vsel %vm240_vm13, 1.0, %v804_v2 }
  0x60   :  { %v682_v63 = vpack.c.bf16 %v423_v15, %v422_v56  ;;  %v581_v0 = vsel %vm241_vm14, 1.0, %v804_v2  ;;  %vm308_vm15 = vcmp.eq.s32.totalorder %v910_v24, %v891_v17  ;;  %vm309_vm0 = vcmp.eq.s32.totalorder %v910_v24, %v894_v18 }
  0x61   :  { %v288_v4 = vadd.f32 %v580_v62, %v220_v60  ;;  %v289_v6 = vadd.f32 %v581_v0, %v221_v61  ;;  %v596_v7 = vsel %vm308_vm15, 1.0, %v804_v2  ;;  %v597_v8 = vsel %vm309_vm0, 1.0, %v804_v2 }
  0x62   :  { %683 = vmatpush3.bf16.msra.mxu0 %v682_v63  ;;  %vm376_vm1 = vcmp.eq.s32.totalorder %v912_v25, %v891_v17  ;;  %vm377_vm2 = vcmp.eq.s32.totalorder %v912_v25, %v894_v18  ;;  %vm106_vm3 = vcmp.eq.s32.totalorder %v904_v21, %v897_v19  ;;  %vm107_vm4 = vcmp.eq.s32.totalorder %v904_v21, %v900_v20 }
  0x63   :  { %684 = vmatprep.subr.bf16.mxu0 %v802_v1  ;;  %v356_v9 = vadd.f32 %v596_v7, %v288_v4  ;;  %v357_v10 = vadd.f32 %v597_v8, %v289_v6  ;;  %v612_v11 = vsel %vm376_vm1, 1.0, %v804_v2  ;;  %v613_v16 = vsel %vm377_vm2, 1.0, %v804_v2 }
  0x64   :  { %v550_v29 = vsel %vm106_vm3, 1.0, %v804_v2  ;;  %v551_v17 = vsel %vm107_vm4, 1.0, %v804_v2  ;;  %vm174_vm5 = vcmp.eq.s32.totalorder %v906_v22, %v897_v19  ;;  %vm175_vm6 = vcmp.eq.s32.totalorder %v906_v22, %v900_v20 }
  0x65   :  { %v424_v18 = vadd.f32 %v612_v11, %v356_v9  ;;  %v425_v30 = vadd.f32 %v613_v16, %v357_v10  ;;  %v566_v31 = vsel %vm174_vm5, 1.0, %v804_v2  ;;  %v567_v32 = vsel %vm175_vm6, 1.0, %v804_v2 }
  0x66   :  { %v222_v33 = vadd.f32 %v566_v31, %v550_v29  ;;  %v223_v34 = vadd.f32 %v567_v32, %v551_v17  ;;  %vm242_vm7 = vcmp.eq.s32.totalorder %v908_v23, %v897_v19  ;;  %vm243_vm8 = vcmp.eq.s32.totalorder %v908_v23, %v900_v20  ;;  %v508_v31 = vld [vmem:[#allocation5] sm:$0x1] }
  0x67   :  { %v685_v35 = vpack.c.bf16 %v425_v30, %v424_v18  ;;  %v582_v36 = vsel %vm242_vm7, 1.0, %v804_v2  ;;  %v583_v37 = vsel %vm243_vm8, 1.0, %v804_v2  ;;  %vm310_vm9 = vcmp.eq.s32.totalorder %v910_v24, %v897_v19  ;;  %v56_v30 = vld [vmem:[#allocation7] sm:$0xff] }
  0x68   :  { %v290_v12 = vadd.f32 %v582_v36, %v222_v33  ;;  %v291_v38 = vadd.f32 %v583_v37, %v223_v34  ;;  %vm311_vm10 = vcmp.eq.s32.totalorder %v910_v24, %v900_v20  ;;  %v598_v13 = vsel %vm310_vm9, 1.0, %v804_v2 }
  0x69   :  { %686 = vmatpush3.bf16.msra.mxu0 %v685_v35  ;;  %v599_v39 = vsel %vm311_vm10, 1.0, %v804_v2  ;;  %vm378_vm11 = vcmp.eq.s32.totalorder %v912_v25, %v897_v19  ;;  %vm379_vm12 = vcmp.eq.s32.totalorder %v912_v25, %v900_v20  ;;  %vm108_vm13 = vcmp.eq.s32.totalorder %v904_v21, %v915_v26 }
  0x6a   :  { %687 = vmatprep.subr.bf16.mxu0 %v802_v1  ;;  %v358_v40 = vadd.f32 %v598_v13, %v290_v12  ;;  %v359_v41 = vadd.f32 %v599_v39, %v291_v38  ;;  %v614_v42 = vsel %vm378_vm11, 1.0, %v804_v2  ;;  %v615_v43 = vsel %vm379_vm12, 1.0, %v804_v2 }
  0x6b   :  { %vm109_vm14 = vcmp.eq.s32.totalorder %v904_v21, %v918_v27  ;;  %v552_v44 = vsel %vm108_vm13, 1.0, %v804_v2  ;;  %vm176_vm15 = vcmp.eq.s32.totalorder %v906_v22, %v915_v26  ;;  %vm177_vm0 = vcmp.eq.s32.totalorder %v906_v22, %v918_v27 }
  0x6c   :  { %v426_v19 = vadd.f32 %v614_v42, %v358_v40  ;;  %v427_v20 = vadd.f32 %v615_v43, %v359_v41  ;;  %v553_v45 = vsel %vm109_vm14, 1.0, %v804_v2  ;;  %v568_v46 = vsel %vm176_vm15, 1.0, %v804_v2 }
  0x6d   :  { %v569_v47 = vsel %vm177_vm0, 1.0, %v804_v2  ;;  %v224_v48 = vadd.f32 %v568_v46, %v552_v44  ;;  %vm244_vm1 = vcmp.eq.s32.totalorder %v908_v23, %v915_v26  ;;  %vm245_vm2 = vcmp.eq.s32.totalorder %v908_v23, %v918_v27 }
  0x6e   :  { %v688_v49 = vpack.c.bf16 %v427_v20, %v426_v19  ;;  %v225_v50 = vadd.f32 %v569_v47, %v553_v45  ;;  %v584_v51 = vsel %vm244_vm1, 1.0, %v804_v2  ;;  %v585_v52 = vsel %vm245_vm2, 1.0, %v804_v2 }
  0x6f   :  { %v292_v53 = vadd.f32 %v584_v51, %v224_v48  ;;  %vm312_vm3 = vcmp.eq.s32.totalorder %v910_v24, %v915_v26  ;;  %vm313_vm4 = vcmp.eq.s32.totalorder %v910_v24, %v918_v27  ;;  %vm380_vm5 = vcmp.eq.s32.totalorder %v912_v25, %v915_v26 }
  0x70   :  { %689 = vmatpush3.bf16.msra.mxu0 %v688_v49  ;;  %v293_v54 = vadd.f32 %v585_v52, %v225_v50  ;;  %v600_v55 = vsel %vm312_vm3, 1.0, %v804_v2  ;;  %v601_v14 = vsel %vm313_vm4, 1.0, %v804_v2  ;;  %vm381_vm6 = vcmp.eq.s32.totalorder %v912_v25, %v918_v27 }
  0x71   :  { %690 = vmatprep.subr.bf16.mxu0 %v802_v1  ;;  %v360_v56 = vadd.f32 %v600_v55, %v292_v53  ;;  %v616_v57 = vsel %vm380_vm5, 1.0, %v804_v2  ;;  %v617_v15 = vsel %vm381_vm6, 1.0, %v804_v2  ;;  %v73_v58 = vadd.s32 120, %v864_v3 }
  0x72   :  { %v361_v59 = vadd.f32 %v601_v14, %v293_v54  ;;  %vm110_vm7 = vcmp.eq.s32.totalorder %v904_v21, %v921_v28  ;;  %vm178_vm8 = vcmp.eq.s32.totalorder %v906_v22, %v921_v28  ;;  %vm246_vm9 = vcmp.eq.s32.totalorder %v908_v23, %v921_v28 }
  0x73   :  { %v428_v26 = vadd.f32 %v616_v57, %v360_v56  ;;  %vm111_vm10 = vcmp.eq.s32.totalorder %v904_v21, %v73_v58  ;;  %v554_v27 = vsel %vm110_vm7, 1.0, %v804_v2  ;;  %vm179_vm11 = vcmp.eq.s32.totalorder %v906_v22, %v73_v58 }
  0x74   :  { %v429_v60 = vadd.f32 %v617_v15, %v361_v59  ;;  %v555_v61 = vsel %vm111_vm10, 1.0, %v804_v2  ;;  %v570_v62 = vsel %vm178_vm8, 1.0, %v804_v2  ;;  %v571_v63 = vsel %vm179_vm11, 1.0, %v804_v2 }
  0x75   :  { %v226_v0 = vadd.f32 %v570_v62, %v554_v27  ;;  %v227_v4 = vadd.f32 %v571_v63, %v555_v61  ;;  %vm247_vm12 = vcmp.eq.s32.totalorder %v908_v23, %v73_v58  ;;  %v586_v6 = vsel %vm246_vm9, 1.0, %v804_v2 }
  0x76   :  { %v691_v7 = vpack.c.bf16 %v429_v60, %v428_v26  ;;  %v587_v21 = vsel %vm247_vm12, 1.0, %v804_v2  ;;  %vm314_vm13 = vcmp.eq.s32.totalorder %v910_v24, %v921_v28  ;;  %vm315_vm14 = vcmp.eq.s32.totalorder %v910_v24, %v73_v58 }
  0x77   :  { %v294_v22 = vadd.f32 %v586_v6, %v226_v0  ;;  %v295_v8 = vadd.f32 %v587_v21, %v227_v4  ;;  %v602_v9 = vsel %vm314_vm13, 1.0, %v804_v2  ;;  %v603_v10 = vsel %vm315_vm14, 1.0, %v804_v2 }
  0x78   :  { %692 = vmatpush3.bf16.msra.mxu0 %v691_v7  ;;  %vm382_vm15 = vcmp.eq.s32.totalorder %v912_v25, %v921_v28  ;;  %vm383_vm0 = vcmp.eq.s32.totalorder %v912_v25, %v73_v58  ;;  %v509_v32 = vcvt.s32.f32 %v508_v31 }
  0x79   :  { %693 = vmatprep.subr.bf16.mxu0 %v802_v1  ;;  %v362_v23 = vadd.f32 %v602_v9, %v294_v22  ;;  %v363_v11 = vadd.f32 %v603_v10, %v295_v8  ;;  %v618_v16 = vsel %vm382_vm15, 1.0, %v804_v2  ;;  %v619_v24 = vsel %vm383_vm0, 1.0, %v804_v2 }
  0x7a   :  { %v511_v33 = vmax.f32 %v509_v32, 1.0  ;;  %vm510_vm1 = vcmp.gt.f32.partialorder %v509_v32, 0.0 }
  0x7b   :  { %v430_v29 = vadd.f32 %v618_v16, %v362_v23  ;;  %v431_v17 = vadd.f32 %v619_v24, %v363_v11 }
  0x7c   :  { %703 = vrcp.f32 %v511_v33 }
  0x7d   :  { %v694_v18 = vpack.c.bf16 %v431_v17, %v430_v29 }
  0x7f   :  { %695 = vmatpush3.bf16.msra.mxu0 %v694_v18 }
  0x82   :  { %670 = vmatmul.mubr.f32.vlgmr.msra.gmra.mrb[0].mxu0 %v56_v30 }
  0x86   :  { %v704_v28 = vpop.eup %703 }
  0x87   :  { %v514_v25 = vsel %vm510_vm1, %v704_v28, 0.0 }
  0x88   :  { %v520_v1 = vrot.slane %v514_v25, %v94_v5 }
 0x155   :  { %v499_v34 = vpop.f32.mrb[0].mxu0 }
 0x156   :  { %v671_v2 = vpop.f32.mrb[1].mxu0  ;;  %v522_v35 = vmul.f32 %v520_v1, %v499_v34 }
 0x158   :  { %523 = vst [vmem:[#allocation8] sm:$0xff] %v522_v35 }
 0x159   :  { %782 = shalt.err (!%p779_p0)
}
 0x15a   :  { %s783_s24 = scalar_lea.hbm %s1178_s3, 128 }
 0x15b   :  { %p784_p1 = scmp.ne.s32.totalorder %s1178_s3, %s783_s24  ;;  %p787_p2 = scmp.lt.u32.totalorder %s783_s24, %s1178_s3 }
 0x15d   :  { %p789_p3 = pnand %p787_p2, %p784_p1 }
 0x15f   :  { %792 = shalt.err (!%p789_p3)
}
 0x160   :  { %533 = dma.vmem_to_hbm [thread:$0]  %s531_s20, 128, %s1178_s3, [#allocation4]  }
 0x161   :  { %797 = dma.done.wait [#allocation4], 128  }
 0x162   :  { %798 = vsyncadd [#allocation4], 4294967168 }
 0x163   :  { %537 = vsyncpa [#allocation3], 1 }
 0x164   :  { %538 = vsyncpa [#allocation6], 1 }
 0x165   :  { %539 = vsyncpa [#allocation4], 1 }

</bundles_post_ra>
